<compile_context>
chip_gen: v6e
topology: v6e:2x2x1
jax: 0.10.0
libtpu: 0.0.40
codegen_flags: <defaults>
</compile_context>

<pallas_src>
import functools

import jax
import jax.numpy as jnp
from jax.experimental import pallas as pl
from jax.experimental.pallas import tpu as pltpu


# ----------------------------------------------------------------------------
# Kernel
# ----------------------------------------------------------------------------
def _safe_critic_kernel(s_ref, w1_ref, b1_ref, w2_ref, b2_ref, w3_ref, b3_ref,
                        out_ref, *, use_tanh):
    """One batch tile of the lane-packed 3-layer MLP.

    Shapes (G = lane-pack factor, S = state_dim, H = hidden):
      s_ref  : (TM, G*S)  -- G original batch rows packed per kernel row
      w1_ref : (G*S, G*H) block-diagonal        b1_ref : (1, G*H) f32
      w2_ref : (G*H, G*H) block-diagonal        b2_ref : (1, G*H) f32
      w3_ref : (G*H, G)   block-diagonal fc3    b3_ref : (1, 1)   f32 in SMEM
      out    : (TM, G)    value of original row r*G + g lands at [r, g]
    """
    act = jnp.tanh if use_tanh else (lambda x: jnp.maximum(x, 0.0))

    # Cast on the VPU in VMEM: no extra HBM pass when weights are bf16.
    x = s_ref[...].astype(w1_ref.dtype)                       # (TM, G*S)
    h = jnp.dot(x, w1_ref[...], preferred_element_type=jnp.float32)
    h = act(h + b1_ref[...])                                  # (TM, G*H) f32
    h = jnp.dot(h.astype(w2_ref.dtype), w2_ref[...],
                preferred_element_type=jnp.float32)
    h = act(h + b2_ref[...])                                  # (TM, G*H) f32
    v = jnp.dot(h.astype(w3_ref.dtype), w3_ref[...],
                preferred_element_type=jnp.float32)           # (TM, G)
    out_ref[...] = (v + b3_ref[0, 0]).astype(out_ref.dtype)


# ----------------------------------------------------------------------------
# One-time parameter packing (outside the jitted hot path)
# ----------------------------------------------------------------------------
def pack_safe_critic_params(w1, b1, w2, b2, w3, b3, *, lane_pack=None,
                            compute_dtype=jnp.float32):
    """Build lane-packed block-diagonal weights.  Call ONCE, reuse per step.

    w1: (S, H), w2: (H, H), w3: (H, 1) -- i.e. PyTorch Linear weights already
    transposed to (in, out).  Biases b1/b2: (1, H), b3: (1, 1).
    """
    state_dim, hidden = w1.shape
    if lane_pack is None:
        lane_pack = max(1, 128 // hidden)       # e.g. 4 for hidden=32
    G = int(lane_pack)

    def block_diag(w):
        i, o = w.shape
        eye = jnp.eye(G, dtype=w.dtype)
        return jnp.einsum("gh,io->giho", eye, w).reshape(G * i, G * o)

    w1p = block_diag(w1).astype(compute_dtype)                     # (G*S, G*H)
    w2p = block_diag(w2).astype(compute_dtype)                     # (G*H, G*H)
    w3p = block_diag(w3.reshape(hidden, 1)).astype(compute_dtype)  # (G*H, G)
    b1p = jnp.tile(b1.reshape(1, hidden), (1, G)).astype(jnp.float32)
    b2p = jnp.tile(b2.reshape(1, hidden), (1, G)).astype(jnp.float32)
    b3p = b3.reshape(1, 1).astype(jnp.float32)
    return w1p, b1p, w2p, b2p, w3p, b3p


# ----------------------------------------------------------------------------
# Forward wrapper
# ----------------------------------------------------------------------------
@functools.partial(jax.jit, static_argnames=("use_tanh", "block_rows"))
def safe_critic_forward(s, w1p, b1p, w2p, b2p, w3p, b3p, *,
                        use_tanh=True, block_rows=8192):
    """cost_value = fc3(act(fc2(act(fc1(s))))) for s of shape (batch, S)."""
    batch, state_dim = s.shape
    gs, gh = w1p.shape
    G = gs // state_dim
    if gs != G * state_dim:
        raise ValueError("packed w1 shape inconsistent with state_dim")

    # Minimal remainder pad so batch is a multiple of G (<= G-1 rows; only
    # taken when needed -- no full-batch padding pass over s).
    rem = batch % G
    if rem:
        s = jnp.pad(s, ((0, G - rem), (0, 0)))
    bp = s.shape[0] // G                                # packed rows
    s_packed = s.reshape(bp, G * state_dim)             # free for contiguous s

    # ---- packed-row tile selection -----------------------------------------
    rows_per_tile = max(block_rows // G, 8)
    if bp > rows_per_tile:
        tm = (rows_per_tile // 8) * 8                   # multi-tile: mult of 8
    elif bp >= 1024:
        tm = ((-(-bp // 2)) + 7) // 8 * 8               # >=2 tiles for v7x TCs
    else:
        tm = bp                                         # single full-dim tile

    # ---- VMEM budget with 128-lane padding (v7x has 64 MiB physical) -------
    def _pad128(n):
        return ((n + 127) // 128) * 128

    per_row_bytes = (2 * _pad128(G * state_dim) * s.dtype.itemsize   # s dbl-buf
                     + 2 * _pad128(G) * 4                            # out dbl-buf
                     + 2 * _pad128(gh) * 4)                          # f32 interm
    budget = 24 * 1024 * 1024
    tm_cap = max((budget // per_row_bytes) // 8 * 8, 8)
    if tm > tm_cap:
        tm = tm_cap
    num_tiles = pl.cdiv(bp, tm)
    vmem_limit = int(min(max(tm * per_row_bytes + (8 << 20), 32 << 20), 56 << 20))

    # ---- advisory cost estimate ---------------------------------------------
    w_bytes = sum(int(a.size) * a.dtype.itemsize
                  for a in (w1p, b1p, w2p, b2p, w3p, b3p))
    flops = 2 * bp * (gs * gh + gh * gh + gh * G)
    transcendentals = 2 * bp * gh if use_tanh else 0
    bytes_accessed = (int(s_packed.size) * s.dtype.itemsize + w_bytes
                      + bp * G * 4)
    cost = pl.CostEstimate(flops=flops, transcendentals=transcendentals,
                           bytes_accessed=bytes_accessed)

    def const_spec(arr):
        n = arr.ndim
        return pl.BlockSpec(arr.shape, lambda i, _n=n: (0,) * _n)

    kernel = functools.partial(_safe_critic_kernel, use_tanh=use_tanh)

    out = pl.pallas_call(
        kernel,
        out_shape=jax.ShapeDtypeStruct((bp, G), jnp.float32),
        grid=(num_tiles,),
        in_specs=[
            pl.BlockSpec((tm, G * state_dim), lambda i: (i, 0)),  # streamed s
            const_spec(w1p),                                      # resident
            const_spec(b1p),
            const_spec(w2p),
            const_spec(b2p),
            const_spec(w3p),
            pl.BlockSpec(memory_space=pltpu.MemorySpace.SMEM),    # b3 scalar
        ],
        out_specs=pl.BlockSpec((tm, G), lambda i: (i, 0)),
        compiler_params=pltpu.CompilerParams(
            dimension_semantics=("parallel",),
            vmem_limit_bytes=vmem_limit),
        cost_estimate=cost,
    )(s_packed, w1p, b1p, w2p, b2p, w3p, b3p)

    # (bp, G) row-major == original batch order; drop the remainder pad.
    return out.reshape(bp * G)[:batch].reshape(batch, 1)


# ----------------------------------------------------------------------------
# Init + pure-JAX reference (mirrors the PyTorch module)
# ----------------------------------------------------------------------------
def init_safe_critic_params(key, state_dim, hidden_width, gain=1.0):
    """Orthogonal weights + zero biases (matches orthogonal_init)."""
    k1, k2, k3 = jax.random.split(key, 3)
    ortho = jax.nn.initializers.orthogonal(scale=gain)
    # PyTorch Linear weight is (out, in); transpose to (in, out) for x @ W.
    w1 = ortho(k1, (hidden_width, state_dim), jnp.float32).T
    w2 = ortho(k2, (hidden_width, hidden_width), jnp.float32).T
    w3 = ortho(k3, (1, hidden_width), jnp.float32).T            # (hidden, 1)
    b1 = jnp.zeros((1, hidden_width), jnp.float32)
    b2 = jnp.zeros((1, hidden_width), jnp.float32)
    b3 = jnp.zeros((1, 1), jnp.float32)
    return w1, b1, w2, b2, w3, b3


def reference_forward(s, w1, b1, w2, b2, w3, b3, use_tanh=True):
    act = jnp.tanh if use_tanh else (lambda x: jnp.maximum(x, 0.0))
    h = act(s @ w1 + b1)
    h = act(h @ w2 + b2)
    return h @ w3 + b3


if __name__ == "__main__":
    key = jax.random.PRNGKey(0)
    k_params, k_small, k_big, k_rag = jax.random.split(key, 4)

    batch, state_dim, hidden_width = 8, 16, 32
    raw = init_safe_critic_params(k_params, state_dim, hidden_width)
    packed = pack_safe_critic_params(*raw)            # once, outside hot path

    # --- f32, single tile ----------------------------------------------------
    s = jax.random.normal(k_small, (batch, state_dim), jnp.float32)
    v = safe_critic_forward(s, *packed)
    jax.block_until_ready(v)
    ref = reference_forward(s, *raw)
    assert v.shape == (batch, 1)
    assert jnp.allclose(v, ref, atol=2e-5, rtol=2e-5)

    # --- f32, multi-tile grid with ragged last tile (no full-batch pad) ------
    big = 3000
    s_big = jax.random.normal(k_big, (big, state_dim), jnp.float32)
    v_big = safe_critic_forward(s_big, *packed, block_rows=512)
    jax.block_until_ready(v_big)
    ref_big = reference_forward(s_big, *raw)
    assert v_big.shape == (big, 1)
    assert jnp.allclose(v_big, ref_big, atol=2e-5, rtol=2e-5)

    # --- batch not a multiple of the lane-pack factor ------------------------
    rag = 301
    s_rag = jax.random.normal(k_rag, (rag, state_dim), jnp.float32)
    v_rag = safe_critic_forward(s_rag, *packed)
    jax.block_until_ready(v_rag)
    ref_rag = reference_forward(s_rag, *raw)
    assert v_rag.shape == (rag, 1)
    assert jnp.allclose(v_rag, ref_rag, atol=2e-5, rtol=2e-5)

    # --- ReLU path (use_tanh=False) ------------------------------------------
    v_relu = safe_critic_forward(s, *packed, use_tanh=False)
    jax.block_until_ready(v_relu)
    ref_relu = reference_forward(s, *raw, use_tanh=False)
    assert jnp.allclose(v_relu, ref_relu, atol=2e-5, rtol=2e-5)

    # --- bf16 weights (pre-cast once; s stays f32 in HBM, cast on the VPU) ---
    # NOTE: matmul operands are bf16 (accumulation/bias/act stay f32), so the
    # result is a reduced-precision approximation of the f32 reference.
    packed_bf16 = pack_safe_critic_params(*raw, compute_dtype=jnp.bfloat16)
    v_bf16 = safe_critic_forward(s, *packed_bf16)
    jax.block_until_ready(v_bf16)
    assert jnp.allclose(v_bf16, ref, atol=5e-2, rtol=5e-2)

    print("KERNEL_OK")
</pallas_src>

<mosaic_0001>
module attributes {stable_mosaic.version = 11 : i64} {
  func.func @_safe_critic_kernel(%arg0: i32, %arg1: memref<2x64xf32, #tpu.memory_space<vmem>>, %arg2: memref<64x128xf32, #tpu.memory_space<vmem>>, %arg3: memref<1x128xf32, #tpu.memory_space<vmem>>, %arg4: memref<128x128xf32, #tpu.memory_space<vmem>>, %arg5: memref<1x128xf32, #tpu.memory_space<vmem>>, %arg6: memref<128x4xf32, #tpu.memory_space<vmem>>, %arg7: memref<1x1xf32, #tpu.memory_space<smem>>, %arg8: memref<2x4xf32, #tpu.memory_space<vmem>>) attributes {dimension_semantics = [#tpu.dimension_semantics<parallel>], iteration_bounds = array<i64: 1>, scalar_prefetch = 0 : i64, scratch_operands = 0 : i64, tpu.core_type = #tpu.core_type<tc>, window_params = [{transform_indices = @transform_0, window_bounds = array<i64: 2, 64>}, {pipeline_mode = #tpu.pipeline_mode<synchronous>, transform_indices = @transform_1, window_bounds = array<i64: 64, 128>}, {pipeline_mode = #tpu.pipeline_mode<synchronous>, transform_indices = @transform_2, window_bounds = array<i64: 1, 128>}, {pipeline_mode = #tpu.pipeline_mode<synchronous>, transform_indices = @transform_3, window_bounds = array<i64: 128, 128>}, {pipeline_mode = #tpu.pipeline_mode<synchronous>, transform_indices = @transform_4, window_bounds = array<i64: 1, 128>}, {pipeline_mode = #tpu.pipeline_mode<synchronous>, transform_indices = @transform_5, window_bounds = array<i64: 128, 4>}, {transform_indices = @transform_6, window_bounds = array<i64: 1, 1>}, {transform_indices = @transform_7, window_bounds = array<i64: 2, 4>}]} {
    %c0 = arith.constant 0 : index
    %c0_0 = arith.constant 0 : index
    %0 = vector.load %arg1[%c0, %c0_0] : memref<2x64xf32, #tpu.memory_space<vmem>>, vector<2x64xf32>
    %c0_1 = arith.constant 0 : index
    %c0_2 = arith.constant 0 : index
    %1 = vector.load %arg2[%c0_1, %c0_2] : memref<64x128xf32, #tpu.memory_space<vmem>>, vector<64x128xf32>
    %cst = arith.constant dense<0.000000e+00> : vector<2x128xf32>
    %2 = tpu.matmul %0, %1, %cst {dimension_numbers = #tpu.dot_dimension_numbers<[1], [0], [0], [1], [0, 0, 1, 1], [], []>} : vector<2x64xf32>, vector<64x128xf32>, vector<2x128xf32> -> vector<2x128xf32>
    %c0_3 = arith.constant 0 : index
    %c0_4 = arith.constant 0 : index
    %3 = vector.load %arg3[%c0_3, %c0_4] : memref<1x128xf32, #tpu.memory_space<vmem>>, vector<1x128xf32>
    %4 = vector.broadcast %3 : vector<1x128xf32> to vector<2x128xf32>
    %5 = arith.addf %2, %4 : vector<2x128xf32>
    %6 = math.tanh %5 : vector<2x128xf32>
    %c0_5 = arith.constant 0 : index
    %c0_6 = arith.constant 0 : index
    %7 = vector.load %arg4[%c0_5, %c0_6] : memref<128x128xf32, #tpu.memory_space<vmem>>, vector<128x128xf32>
    %cst_7 = arith.constant dense<0.000000e+00> : vector<2x128xf32>
    %8 = tpu.matmul %6, %7, %cst_7 {dimension_numbers = #tpu.dot_dimension_numbers<[1], [0], [0], [1], [0, 0, 1, 1], [], []>} : vector<2x128xf32>, vector<128x128xf32>, vector<2x128xf32> -> vector<2x128xf32>
    %c0_8 = arith.constant 0 : index
    %c0_9 = arith.constant 0 : index
    %9 = vector.load %arg5[%c0_8, %c0_9] : memref<1x128xf32, #tpu.memory_space<vmem>>, vector<1x128xf32>
    %10 = vector.broadcast %9 : vector<1x128xf32> to vector<2x128xf32>
    %11 = arith.addf %8, %10 : vector<2x128xf32>
    %12 = math.tanh %11 : vector<2x128xf32>
    %c0_10 = arith.constant 0 : index
    %c0_11 = arith.constant 0 : index
    %13 = vector.load %arg6[%c0_10, %c0_11] : memref<128x4xf32, #tpu.memory_space<vmem>>, vector<128x4xf32>
    %cst_12 = arith.constant dense<0.000000e+00> : vector<2x4xf32>
    %14 = tpu.matmul %12, %13, %cst_12 {dimension_numbers = #tpu.dot_dimension_numbers<[1], [0], [0], [1], [0, 0, 1, 1], [], []>} : vector<2x128xf32>, vector<128x4xf32>, vector<2x4xf32> -> vector<2x4xf32>
    %c0_13 = arith.constant 0 : index
    %c0_14 = arith.constant 0 : index
    %15 = memref.load %arg7[%c0_13, %c0_14] : memref<1x1xf32, #tpu.memory_space<smem>>
    %16 = vector.broadcast %15 : f32 to vector<2x4xf32>
    %17 = arith.addf %14, %16 : vector<2x4xf32>
    %c0_15 = arith.constant 0 : index
    %c0_16 = arith.constant 0 : index
    %18 = vector.load %arg8[%c0_15, %c0_16] : memref<2x4xf32, #tpu.memory_space<vmem>>, vector<2x4xf32>
    tpu.vector_store %arg8[%c0_15, %c0_16], %17 {strides = array<i32>} : memref<2x4xf32, #tpu.memory_space<vmem>>, vector<2x4xf32>,
    return
  }
  func.func @transform_0(%arg0: i32) -> (i32, i32) {
    %c0_i32 = arith.constant 0 : i32
    %c0_i32_0 = arith.constant 0 : i32
    return %arg0, %c0_i32 : i32, i32
  }
  func.func @transform_1(%arg0: i32) -> (i32, i32) {
    %c0_i32 = arith.constant 0 : i32
    %c0_i32_0 = arith.constant 0 : i32
    %c0_i32_1 = arith.constant 0 : i32
    return %c0_i32, %c0_i32_0 : i32, i32
  }
  func.func @transform_2(%arg0: i32) -> (i32, i32) {
    %c0_i32 = arith.constant 0 : i32
    %c0_i32_0 = arith.constant 0 : i32
    %c0_i32_1 = arith.constant 0 : i32
    return %c0_i32, %c0_i32_0 : i32, i32
  }
  func.func @transform_3(%arg0: i32) -> (i32, i32) {
    %c0_i32 = arith.constant 0 : i32
    %c0_i32_0 = arith.constant 0 : i32
    %c0_i32_1 = arith.constant 0 : i32
    return %c0_i32, %c0_i32_0 : i32, i32
  }
  func.func @transform_4(%arg0: i32) -> (i32, i32) {
    %c0_i32 = arith.constant 0 : i32
    %c0_i32_0 = arith.constant 0 : i32
    %c0_i32_1 = arith.constant 0 : i32
    return %c0_i32, %c0_i32_0 : i32, i32
  }
  func.func @transform_5(%arg0: i32) -> (i32, i32) {
    %c0_i32 = arith.constant 0 : i32
    %c0_i32_0 = arith.constant 0 : i32
    %c0_i32_1 = arith.constant 0 : i32
    return %c0_i32, %c0_i32_0 : i32, i32
  }
  func.func @transform_6(%arg0: i32) -> (i32, i32) {
    %c0_i32 = arith.constant 0 : i32
    %c0_i32_0 = arith.constant 0 : i32
    %c0_i32_1 = arith.constant 0 : i32
    return %c0_i32, %c0_i32_0 : i32, i32
  }
  func.func @transform_7(%arg0: i32) -> (i32, i32) {
    %c0_i32 = arith.constant 0 : i32
    %c0_i32_0 = arith.constant 0 : i32
    return %arg0, %c0_i32 : i32, i32
  }
}

</mosaic_0001>

<bundles_post_ra>
// kernel: safe_critic_forward.1
= control target key start
LH: loop header
LB: loop body
LE: loop exit
PB: predicated region body
PF: predicated region fallthrough
CT: control target
= control target key end

     0   :  { %13 = vsyncpa [#allocation4], 0  ;;  %s487_s24 = smov [#allocation3]   ;;  %s692_s0 = inlined_call_operand.vmem [shape: f32[2,64], index: 0, kind: input, shape index: {}]   ;;  %s693_s1 = inlined_call_operand.hbm [shape: f32[64,128], index: 1, kind: input, shape index: {}]   ;;  %s694_s2 = inlined_call_operand.vmem [shape: f32[1,128], index: 2, kind: input, shape index: {}]   ;;  %s695_s3 = inlined_call_operand.vmem [shape: f32[128,128], index: 3, kind: input, shape index: {}]   ;;  %s696_s4 = inlined_call_operand.vmem [shape: f32[1,128], index: 4, kind: input, shape index: {}]   ;;  %s697_s5 = inlined_call_operand.vmem [shape: f32[128,4], index: 5, kind: input, shape index: {}]   ;;  %s698_s6 = inlined_call_operand.<no memory space> [shape: f32[1,1], index: 6, kind: input, shape index: {}]   ;;  %s699_s7 = inlined_call_operand.vmem [shape: f32[2,4], index: 7, kind: output, shape index: {}]  }
   0x1   :  { %s21_s25 = sshll.u32 %s487_s24, 4  ;;  %s22_s25 = int_to_ptr.vmem [resolvable:$true] %s21_s25 }
   0x2   :  { %s473_s26 = scalar_lea.vmem %s22_s25, 1024  ;;  %p478_p1 = scmp.lt.s32.totalorder %s22_s25, %s22_s25 }
   0x3   :  { %p474_p0 = scmp.ne.s32.totalorder %s22_s25, %s473_s26  ;;  %p479_p2 = scmp.lt.s32.totalorder %s473_s26, %s473_s26 }
   0x5   :  { %p480_p3 = por %p479_p2, %p478_p1 }
   0x7   :  { %p481_p4 = pnand %p480_p3, %p474_p0 }
   0x9   :  { %484 = shalt.err (!%p481_p4)
}
   0xa   :  { %s488_s27 = smov 128   ;;  %s489_s28 = smov 8  }
   0xb   :  { %27 = dma.hbm_to_vmem [thread:$0]  %s693_s1, 1024, %s22_s25, [#allocation4], %s488_s27, %s488_s27, %s489_s28  }
   0xc   :  { %485 = dma.done.wait [#allocation4], 1024  }
   0xd   :  { %486 = vsyncadd [#allocation4], 4294966272  ;;  %v490_v0 = vmov 0.0   ;;  %vm491_vm0 = vmmov 0   ;;  %v49_v1 = vld [vmem:[#allocation3 + $0x38] sm:$0xff]  ;;  %v48_v2 = vld [vmem:[#allocation3 + $0x30] sm:$0xff]  ;;  %v243_v52 = vstv %s698_s6 }
   0xe   :  { %367 = vmatprep.subr.mxu0 %v490_v0  ;;  %383 = vmatprep.mubr.msk.f32.mxu0 %vm491_vm0, %v490_v0  ;;  %v47_v3 = vld [vmem:[#allocation3 + $0x28] sm:$0xff]  ;;  %v147_v4 = vld [vmem:[%s695_s3 + $0x78] sm:$0xff]  ;;  %v146_v5 = vld [vmem:[%s695_s3 + $0x70] sm:$0xff]  ;;  %vm57_vm1 = vcmask 523264   ;;  %vm314_vm2 = vcmask 25600  }
   0xf   :  { %386 = vmatprep.subr.mxu1 %v490_v0  ;;  %418 = vmatprep.mubr.msk.f32.mxu1 %vm491_vm0, %v490_v0  ;;  %v46_v6 = vld [vmem:[#allocation3 + $0x20] sm:$0xff]  ;;  %v145_v7 = vld [vmem:[%s695_s3 + $0x68] sm:$0xff]  ;;  %v45_v8 = vld [vmem:[#allocation3 + $0x18] sm:$0xff] }
  0x10   :  { %368 = vmatpush3.msra.mxu0 %v49_v1  ;;  %387 = vmatpush3.msra.mxu1 %v147_v4  ;;  %v144_v9 = vld [vmem:[%s695_s3 + $0x60] sm:$0xff]  ;;  %v44_v10 = vld [vmem:[#allocation3 + $0x10] sm:$0xff]  ;;  %v143_v11 = vld [vmem:[%s695_s3 + $0x58] sm:$0xff] }
  0x11   :  { %369 = vmatprep.subr.mxu0 %v490_v0  ;;  %388 = vmatprep.subr.mxu1 %v490_v0  ;;  %v43_v12 = vld [vmem:[#allocation3 + $0x8] sm:$0xff]  ;;  %v142_v13 = vld [vmem:[%s695_s3 + $0x50] sm:$0xff]  ;;  %v42_v14 = vld [vmem:[#allocation3] sm:$0xff] }
  0x12   :  { %370 = vmatpush3.msra.mxu0 %v48_v2  ;;  %389 = vmatpush3.msra.mxu1 %v146_v5  ;;  %v41_v15 = vld [vmem:[%s692_s0] sm:$0x3]  ;;  %v141_v16 = vld [vmem:[%s695_s3 + $0x48] sm:$0xff]  ;;  %v139_v18 = vld [vmem:[%s695_s3 + $0x38] sm:$0xff] }
  0x13   :  { %371 = vmatprep.subr.mxu0 %v490_v0  ;;  %390 = vmatprep.subr.mxu1 %v490_v0  ;;  %v140_v17 = vld [vmem:[%s695_s3 + $0x40] sm:$0xff]  ;;  %v138_v19 = vld [vmem:[%s695_s3 + $0x30] sm:$0xff]  ;;  %v137_v20 = vld [vmem:[%s695_s3 + $0x28] sm:$0xff] }
  0x14   :  { %372 = vmatpush3.msra.mxu0 %v47_v3  ;;  %391 = vmatpush3.msra.mxu1 %v145_v7  ;;  %v136_v21 = vld [vmem:[%s695_s3 + $0x20] sm:$0xff]  ;;  %v135_v22 = vld [vmem:[%s695_s3 + $0x18] sm:$0xff]  ;;  %v134_v23 = vld [vmem:[%s695_s3 + $0x10] sm:$0xff] }
  0x15   :  { %373 = vmatprep.subr.mxu0 %v490_v0  ;;  %392 = vmatprep.subr.mxu1 %v490_v0  ;;  %v133_v24 = vld [vmem:[%s695_s3 + $0x8] sm:$0xff]  ;;  %v132_v25 = vld [vmem:[%s695_s3] sm:$0xff]  ;;  %v241_v26 = vld [vmem:[%s697_s5 + $0x78] sm:$0xff] }
  0x16   :  { %374 = vmatpush3.msra.mxu0 %v46_v6  ;;  %393 = vmatpush3.msra.mxu1 %v144_v9  ;;  %v240_v27 = vld [vmem:[%s697_s5 + $0x70] sm:$0xff]  ;;  %v239_v28 = vld [vmem:[%s697_s5 + $0x68] sm:$0xff]  ;;  %v238_v29 = vld [vmem:[%s697_s5 + $0x60] sm:$0xff] }
  0x17   :  { %375 = vmatprep.subr.mxu0 %v490_v0  ;;  %394 = vmatprep.subr.mxu1 %v490_v0  ;;  %v237_v30 = vld [vmem:[%s697_s5 + $0x58] sm:$0xff]  ;;  %v236_v31 = vld [vmem:[%s697_s5 + $0x50] sm:$0xff]  ;;  %v235_v32 = vld [vmem:[%s697_s5 + $0x48] sm:$0xff] }
  0x18   :  { %376 = vmatpush3.msra.mxu0 %v45_v8  ;;  %395 = vmatpush3.msra.mxu1 %v143_v11  ;;  %v321_v33 = vld [vmem:[%s694_s2] ss:$0 sm:$0xff]  ;;  %v233_v39 = vld [vmem:[%s697_s5 + $0x38] sm:$0xff]  ;;  %v232_v40 = vld [vmem:[%s697_s5 + $0x30] sm:$0xff] }
  0x19   :  { %377 = vmatprep.subr.mxu0 %v490_v0  ;;  %396 = vmatprep.subr.mxu1 %v490_v0  ;;  %v234_v38 = vld [vmem:[%s697_s5 + $0x40] sm:$0xff]  ;;  %v231_v41 = vld [vmem:[%s697_s5 + $0x28] sm:$0xff]  ;;  %v229_v43 = vld [vmem:[%s697_s5 + $0x18] sm:$0xff] }
  0x1a   :  { %378 = vmatpush3.msra.mxu0 %v44_v10  ;;  %397 = vmatpush3.msra.mxu1 %v142_v13  ;;  %v230_v42 = vld [vmem:[%s697_s5 + $0x20] sm:$0xff]  ;;  %v228_v44 = vld [vmem:[%s697_s5 + $0x10] sm:$0xff]  ;;  %v227_v45 = vld [vmem:[%s697_s5 + $0x8] sm:$0xff] }
  0x1b   :  { %379 = vmatprep.subr.mxu0 %v490_v0  ;;  %398 = vmatprep.subr.mxu1 %v490_v0  ;;  %v226_v46 = vld [vmem:[%s697_s5] sm:$0xff] }
  0x1c   :  { %380 = vmatpush3.msra.mxu0 %v43_v12  ;;  %399 = vmatpush3.msra.mxu1 %v141_v16  ;;  %v323_v47 = vld [vmem:[%s696_s4] ss:$0 sm:$0xff] }
  0x1d   :  { %381 = vmatprep.subr.mxu0 %v490_v0  ;;  %400 = vmatprep.subr.mxu1 %v490_v0 }
  0x1e   :  { %382 = vmatpush3.msra.mxu0 %v42_v14  ;;  %401 = vmatpush3.msra.mxu1 %v140_v17 }
  0x1f   :  { %384 = vmatmul.mubr.msk.f32.vlgmr.msra.gmra.mxu0 %vm57_vm1, %v41_v15  ;;  %421 = vmatprep.subr.mxu0 %v490_v0 }
  0x20   :  { %453 = vmatprep.mubr.msk.f32.mxu0 %vm491_vm0, %v490_v0  ;;  %402 = vmatprep.subr.mxu1 %v490_v0 }
  0x21   :  { %403 = vmatpush3.msra.mxu1 %v139_v18  ;;  %422 = vmatpush3.msra.mxu0 %v241_v26 }
  0x22   :  { %404 = vmatprep.subr.mxu1 %v490_v0  ;;  %423 = vmatprep.subr.mxu0 %v490_v0 }
  0x23   :  { %405 = vmatpush3.msra.mxu1 %v138_v19  ;;  %424 = vmatpush3.msra.mxu0 %v240_v27 }
  0x24   :  { %406 = vmatprep.subr.mxu1 %v490_v0  ;;  %425 = vmatprep.subr.mxu0 %v490_v0 }
  0x25   :  { %407 = vmatpush3.msra.mxu1 %v137_v20  ;;  %426 = vmatpush3.msra.mxu0 %v239_v28 }
  0x26   :  { %408 = vmatprep.subr.mxu1 %v490_v0  ;;  %427 = vmatprep.subr.mxu0 %v490_v0 }
  0x27   :  { %409 = vmatpush3.msra.mxu1 %v136_v21  ;;  %428 = vmatpush3.msra.mxu0 %v238_v29 }
  0x28   :  { %410 = vmatprep.subr.mxu1 %v490_v0  ;;  %429 = vmatprep.subr.mxu0 %v490_v0 }
  0x29   :  { %411 = vmatpush3.msra.mxu1 %v135_v22  ;;  %430 = vmatpush3.msra.mxu0 %v237_v30 }
  0x2a   :  { %412 = vmatprep.subr.mxu1 %v490_v0  ;;  %431 = vmatprep.subr.mxu0 %v490_v0 }
  0x2b   :  { %413 = vmatpush3.msra.mxu1 %v134_v23  ;;  %432 = vmatpush3.msra.mxu0 %v236_v31 }
  0x2c   :  { %414 = vmatprep.subr.mxu1 %v490_v0  ;;  %433 = vmatprep.subr.mxu0 %v490_v0 }
  0x2d   :  { %415 = vmatpush3.msra.mxu1 %v133_v24  ;;  %434 = vmatpush3.msra.mxu0 %v235_v32 }
  0x2e   :  { %416 = vmatprep.subr.mxu1 %v490_v0  ;;  %435 = vmatprep.subr.mxu0 %v490_v0 }
  0x2f   :  { %417 = vmatpush3.msra.mxu1 %v132_v25  ;;  %436 = vmatpush3.msra.mxu0 %v234_v38 }
  0x30   :  { %437 = vmatprep.subr.mxu0 %v490_v0 }
  0x31   :  { %438 = vmatpush3.msra.mxu0 %v233_v39 }
  0x32   :  { %439 = vmatprep.subr.mxu0 %v490_v0 }
  0x33   :  { %440 = vmatpush3.msra.mxu0 %v232_v40 }
  0x34   :  { %441 = vmatprep.subr.mxu0 %v490_v0 }
  0x35   :  { %442 = vmatpush3.msra.mxu0 %v231_v41 }
  0x36   :  { %443 = vmatprep.subr.mxu0 %v490_v0 }
  0x37   :  { %444 = vmatpush3.msra.mxu0 %v230_v42 }
  0x38   :  { %445 = vmatprep.subr.mxu0 %v490_v0 }
  0x39   :  { %446 = vmatpush3.msra.mxu0 %v229_v43 }
  0x3a   :  { %447 = vmatprep.subr.mxu0 %v490_v0 }
  0x3b   :  { %448 = vmatpush3.msra.mxu0 %v228_v44 }
  0x3c   :  { %449 = vmatprep.subr.mxu0 %v490_v0 }
  0x3d   :  { %450 = vmatpush3.msra.mxu0 %v227_v45 }
  0x3e   :  { %451 = vmatprep.subr.mxu0 %v490_v0 }
  0x3f   :  { %452 = vmatpush3.msra.mxu0 %v226_v46 }
  0xdf   :  { %v127_v34 = vpop.f32.mrf.mxu0 }
  0xe0   :  { %v128_v35 = vadd.f32 %v321_v33, %v127_v34 }
  0xe1   :  { %v385_v36 = vpop.f32.mrf.mxu0 }
  0xe2   :  { %461 = vtanh.f32 %v128_v35 }
  0xef   :  { %v462_v37 = vpop.eup %461 }
  0xf0   :  { %419 = vmatmul.mubr.f32.vlgmr.msra.gmra.mxu1 %v462_v37 }
 0x1b0   :  { %v221_v48 = vpop.f32.mrf.mxu1 }
 0x1b1   :  { %v222_v49 = vadd.f32 %v323_v47, %v221_v48 }
 0x1b2   :  { %v420_v50 = vpop.f32.mrf.mxu1 }
 0x1b3   :  { %463 = vtanh.f32 %v222_v49 }
 0x1c0   :  { %v464_v51 = vpop.eup %463 }
 0x1c1   :  { %454 = vmatmul.mubr.f32.vlgmr.msra.gmra.mxu0 %v464_v51 }
 0x281   :  { %v310_v53 = vpop.f32.mrf.mxu0 }
 0x282   :  { %v311_v54 = vadd.f32 %v310_v53, %v243_v52 }
 0x283   :  { %v455_v55 = vpop.f32.mrf.mxu0 }
 0x284   :  { %315 = vst.msk [vmem:[%s699_s7] sm:$0x3] %vm314_vm2, %v311_v54 }
 0x285   :  { %320 = vsyncpa [#allocation4], 1 }

</bundles_post_ra>
